<compile_context>
chip_gen: v7x
topology: tpu7x:2x2x1
jax: 0.10.0
libtpu: 0.0.40
codegen_flags: <defaults>
</compile_context>

<pallas_src>
import math

import jax
import jax.numpy as jnp
from jax.experimental import pallas as pl
from jax.experimental.pallas import tpu as pltpu


# -------------------- model dims (small, consistent with the module) ---------
B = 2            # batch
S = 8            # sequence length
H = 32           # hidden_size
V = 128          # vocab size (embedding rows) -- lane-dense output width
LANE = 128
LN_EPS = 1e-12

# rows inside the packed (8, LANE) vector slab
ROW_BT, ROW_G, ROW_BE, ROW_DB, ROW_BS = 0, 1, 2, 3, 4


def _gelu(x):
    # erf-based GELU, exactly as in the reference `gelu`
    return x * 0.5 * (1.0 + jax.lax.erf(x / math.sqrt(2.0)))


# -------------------- fused kernel: both heads in one body -------------------
def heads_kernel(seq_ref, pooled_ref, w_ref, v_ref, pred_ref, rel_ref):
    # Everything is tiny and VMEM-resident (< 60 KB total); load whole arrays once.
    x = seq_ref[...]          # (B*S, H)
    p = pooled_ref[...]       # (B, H)
    w = w_ref[...]            # (3, H, LANE): [wtT | 0], decT, [wsT | 0]
    vs = v_ref[...]           # (8, LANE) packed bias / LayerNorm vectors

    bt = vs[ROW_BT:ROW_BT + 1, :H]     # (1, H)  transform dense bias
    g = vs[ROW_G:ROW_G + 1, :H]        # (1, H)  LayerNorm gamma
    be = vs[ROW_BE:ROW_BE + 1, :H]     # (1, H)  LayerNorm beta
    db = vs[ROW_DB:ROW_DB + 1, :]      # (1, LANE) decoder output bias (V = 128)
    bs = vs[ROW_BS:ROW_BS + 1, :]      # (1, LANE) NSP bias, zero-padded past col 2

    # ---- BertPredictionHeadTransform: dense -> erf-gelu -> LayerNorm --------
    h = jnp.dot(x, w[0, :, :H], preferred_element_type=jnp.float32) + bt   # (B*S, H)
    h = _gelu(h)
    u = jnp.mean(h, axis=-1, keepdims=True)
    s = jnp.mean((h - u) ** 2, axis=-1, keepdims=True)
    h = g * ((h - u) * jax.lax.rsqrt(s + LN_EPS)) + be

    # ---- decoder (tied embedding weights) + bias -> (B*S, V) lane-dense -----
    scores = jnp.dot(h, w[1], preferred_element_type=jnp.float32) + db
    pred_ref[...] = scores.astype(pred_ref.dtype)

    # ---- seq_relationship Linear(H -> 2), computed lane-dense (H -> 128) ----
    rel = jnp.dot(p, w[2], preferred_element_type=jnp.float32) + bs
    rel_ref[...] = rel.astype(rel_ref.dtype)


# -------------------- parameter packing (done once, outside the kernel) ------
def pack_params(p):
    """Pack the 8 small parameter arrays into two VMEM-friendly slabs."""
    w = jnp.zeros((3, H, LANE), jnp.float32)
    w = w.at[0, :, :H].set(p['wtT'])        # transform dense weight (pre-transposed)
    w = w.at[1, :, :V].set(p['decT'])       # tied embedding weight, transposed (H, V)
    w = w.at[2, :, :2].set(p['wsT'])        # NSP weight (H, 2), zero-padded to 128

    v = jnp.zeros((8, LANE), jnp.float32)
    v = v.at[ROW_BT, :H].set(p['bt'])
    v = v.at[ROW_G, :H].set(p['g'])
    v = v.at[ROW_BE, :H].set(p['be'])
    v = v.at[ROW_DB, :V].set(p['db'])
    v = v.at[ROW_BS, :2].set(p['bs'])
    return w, v


def bert_pretraining_heads_pallas(sequence_output, pooled_output, w_slab, v_slab):
    """sequence_output: (B, S, H) f32, pooled_output: (B, H) f32.

    Returns (prediction_scores (B, S, V), seq_relationship_score (B, 2))."""
    seq_flat = sequence_output.reshape(B * S, H)   # batch collapsed into sublanes

    vmem = pl.BlockSpec(memory_space=pltpu.MemorySpace.VMEM)

    pred_flat, rel_wide = pl.pallas_call(
        heads_kernel,
        out_shape=(
            jax.ShapeDtypeStruct((B * S, V), jnp.float32),     # lane-dense
            jax.ShapeDtypeStruct((B, LANE), jnp.float32),      # lane-dense, sliced below
        ),
        in_specs=[vmem, vmem, vmem, vmem],
        out_specs=(vmem, vmem),
    )(seq_flat, pooled_output, w_slab, v_slab)

    return pred_flat.reshape(B, S, V), rel_wide[:, :2]


# -------------------- pure-JAX reference for verification --------------------
def bert_pretraining_heads_ref(sequence_output, pooled_output, p):
    h = sequence_output @ p['wtT'] + p['bt']
    h = _gelu(h)
    u = h.mean(-1, keepdims=True)
    s = ((h - u) ** 2).mean(-1, keepdims=True)
    h = p['g'] * ((h - u) / jnp.sqrt(s + LN_EPS)) + p['be']
    pred = h @ p['decT'] + p['db']
    rel = pooled_output @ p['wsT'] + p['bs']
    return pred, rel


# -------------------- deterministic parameter init ---------------------------
def init_params(key):
    ks = jax.random.split(key, 6)
    scale = 0.02
    # transform dense (H -> H), stored pre-transposed as (in, out)
    wtT = scale * jax.random.normal(ks[0], (H, H), jnp.float32)
    bt = scale * jax.random.normal(ks[1], (H,), jnp.float32)
    # LayerNorm
    g = jnp.ones((H,), jnp.float32)
    be = jnp.zeros((H,), jnp.float32)
    # tied embedding weights E: (V, H); decoder computes x @ E^T -> store E^T
    emb = scale * jax.random.normal(ks[2], (V, H), jnp.float32)
    decT = emb.T                                                  # (H, V)
    db = scale * jax.random.normal(ks[3], (V,), jnp.float32)      # decoder output bias
    # seq_relationship Linear(H -> 2)
    wsT = scale * jax.random.normal(ks[4], (H, 2), jnp.float32)
    bs = scale * jax.random.normal(ks[5], (2,), jnp.float32)
    return dict(wtT=wtT, bt=bt, g=g, be=be, decT=decT, db=db, wsT=wsT, bs=bs)


if __name__ == "__main__":
    key = jax.random.PRNGKey(0)
    k_seq, k_pool, k_p = jax.random.split(key, 3)

    sequence_output = jax.random.normal(k_seq, (B, S, H), jnp.float32)
    pooled_output = jax.random.normal(k_pool, (B, H), jnp.float32)
    params = init_params(k_p)
    w_slab, v_slab = pack_params(params)

    pred, rel = bert_pretraining_heads_pallas(sequence_output, pooled_output,
                                              w_slab, v_slab)
    pred = jax.block_until_ready(pred)
    rel = jax.block_until_ready(rel)

    pred_ref, rel_ref = bert_pretraining_heads_ref(sequence_output, pooled_output, params)
    pred_ref = jax.block_until_ready(pred_ref)
    rel_ref = jax.block_until_ready(rel_ref)

    assert pred.shape == (B, S, V)
    assert rel.shape == (B, 2)
    assert jnp.max(jnp.abs(pred - pred_ref)) < 1e-3, "prediction_scores mismatch"
    assert jnp.max(jnp.abs(rel - rel_ref)) < 1e-3, "seq_relationship mismatch"
    print("KERNEL_OK")
</pallas_src>

<mosaic_0001>
module attributes {stable_mosaic.version = 11 : i64} {
  func.func @heads_kernel(%arg0: memref<16x32xf32, #tpu.memory_space<vmem>>, %arg1: memref<2x32xf32, #tpu.memory_space<vmem>>, %arg2: memref<3x32x128xf32, #tpu.memory_space<vmem>>, %arg3: memref<8x128xf32, #tpu.memory_space<vmem>>, %arg4: memref<16x128xf32, #tpu.memory_space<vmem>>, %arg5: memref<2x128xf32, #tpu.memory_space<vmem>>) attributes {dimension_semantics = [], scalar_prefetch = 0 : i64, scratch_operands = 0 : i64, tpu.core_type = #tpu.core_type<tc>} {
    %c0 = arith.constant 0 : index
    %c0_0 = arith.constant 0 : index
    %0 = vector.load %arg0[%c0, %c0_0] : memref<16x32xf32, #tpu.memory_space<vmem>>, vector<16x32xf32>
    %c0_1 = arith.constant 0 : index
    %c0_2 = arith.constant 0 : index
    %1 = vector.load %arg1[%c0_1, %c0_2] : memref<2x32xf32, #tpu.memory_space<vmem>>, vector<2x32xf32>
    %c0_3 = arith.constant 0 : index
    %c0_4 = arith.constant 0 : index
    %c0_5 = arith.constant 0 : index
    %2 = vector.load %arg2[%c0_3, %c0_4, %c0_5] : memref<3x32x128xf32, #tpu.memory_space<vmem>>, vector<3x32x128xf32>
    %c0_6 = arith.constant 0 : index
    %c0_7 = arith.constant 0 : index
    %3 = vector.load %arg3[%c0_6, %c0_7] : memref<8x128xf32, #tpu.memory_space<vmem>>, vector<8x128xf32>
    %4 = vector.extract_strided_slice %3 {offsets = [0, 0], sizes = [1, 32], strides = [1, 1]} : vector<8x128xf32> to vector<1x32xf32>
    %5 = vector.extract_strided_slice %3 {offsets = [1, 0], sizes = [1, 32], strides = [1, 1]} : vector<8x128xf32> to vector<1x32xf32>
    %6 = vector.extract_strided_slice %3 {offsets = [2, 0], sizes = [1, 32], strides = [1, 1]} : vector<8x128xf32> to vector<1x32xf32>
    %7 = vector.extract_strided_slice %3 {offsets = [3, 0], sizes = [1, 128], strides = [1, 1]} : vector<8x128xf32> to vector<1x128xf32>
    %8 = vector.extract_strided_slice %3 {offsets = [4, 0], sizes = [1, 128], strides = [1, 1]} : vector<8x128xf32> to vector<1x128xf32>
    %9 = vector.extract_strided_slice %2 {offsets = [0, 0, 0], sizes = [1, 32, 32], strides = [1, 1, 1]} : vector<3x32x128xf32> to vector<1x32x32xf32>
    %10 = vector.shape_cast %9 : vector<1x32x32xf32> to vector<32x32xf32>
    %cst = arith.constant dense<0.000000e+00> : vector<16x32xf32>
    %11 = tpu.matmul %0, %10, %cst {dimension_numbers = #tpu.dot_dimension_numbers<[1], [0], [0], [1], [0, 0, 1, 1], [], []>} : vector<16x32xf32>, vector<32x32xf32>, vector<16x32xf32> -> vector<16x32xf32>
    %12 = vector.broadcast %4 : vector<1x32xf32> to vector<16x32xf32>
    %13 = arith.addf %11, %12 : vector<16x32xf32>
    %cst_8 = arith.constant 5.000000e-01 : f32
    %14 = vector.broadcast %cst_8 : f32 to vector<16x32xf32>
    %15 = arith.mulf %13, %14 : vector<16x32xf32>
    %cst_9 = arith.constant 1.41421354 : f32
    %16 = vector.broadcast %cst_9 : f32 to vector<16x32xf32>
    %17 = arith.divf %13, %16 : vector<16x32xf32>
    %18 = math.erf %17 : vector<16x32xf32>
    %cst_10 = arith.constant 1.000000e+00 : f32
    %19 = vector.broadcast %cst_10 : f32 to vector<16x32xf32>
    %20 = arith.addf %19, %18 : vector<16x32xf32>
    %21 = arith.mulf %15, %20 : vector<16x32xf32>
    %cst_11 = arith.constant dense<0.000000e+00> : vector<16xf32>
    %22 = vector.multi_reduction <add>, %21, %cst_11 [1] : vector<16x32xf32> to vector<16xf32>
    %23 = vector.shape_cast %22 : vector<16xf32> to vector<16x1xf32>
    %cst_12 = arith.constant 3.200000e+01 : f32
    %24 = vector.broadcast %cst_12 : f32 to vector<16x1xf32>
    %25 = arith.divf %23, %24 : vector<16x1xf32>
    %26 = vector.broadcast %25 : vector<16x1xf32> to vector<16x32xf32>
    %27 = arith.subf %21, %26 : vector<16x32xf32>
    %28 = arith.mulf %27, %27 : vector<16x32xf32>
    %cst_13 = arith.constant dense<0.000000e+00> : vector<16xf32>
    %29 = vector.multi_reduction <add>, %28, %cst_13 [1] : vector<16x32xf32> to vector<16xf32>
    %30 = vector.shape_cast %29 : vector<16xf32> to vector<16x1xf32>
    %cst_14 = arith.constant 3.200000e+01 : f32
    %31 = vector.broadcast %cst_14 : f32 to vector<16x1xf32>
    %32 = arith.divf %30, %31 : vector<16x1xf32>
    %33 = vector.broadcast %25 : vector<16x1xf32> to vector<16x32xf32>
    %34 = arith.subf %21, %33 : vector<16x32xf32>
    %cst_15 = arith.constant 9.99999996E-13 : f32
    %35 = vector.broadcast %cst_15 : f32 to vector<16x1xf32>
    %36 = arith.addf %32, %35 : vector<16x1xf32>
    %37 = math.rsqrt %36 : vector<16x1xf32>
    %38 = vector.broadcast %37 : vector<16x1xf32> to vector<16x32xf32>
    %39 = arith.mulf %34, %38 : vector<16x32xf32>
    %40 = vector.broadcast %5 : vector<1x32xf32> to vector<16x32xf32>
    %41 = arith.mulf %40, %39 : vector<16x32xf32>
    %42 = vector.broadcast %6 : vector<1x32xf32> to vector<16x32xf32>
    %43 = arith.addf %41, %42 : vector<16x32xf32>
    %44 = vector.extract_strided_slice %2 {offsets = [1, 0, 0], sizes = [1, 32, 128], strides = [1, 1, 1]} : vector<3x32x128xf32> to vector<1x32x128xf32>
    %45 = vector.shape_cast %44 : vector<1x32x128xf32> to vector<32x128xf32>
    %cst_16 = arith.constant dense<0.000000e+00> : vector<16x128xf32>
    %46 = tpu.matmul %43, %45, %cst_16 {dimension_numbers = #tpu.dot_dimension_numbers<[1], [0], [0], [1], [0, 0, 1, 1], [], []>} : vector<16x32xf32>, vector<32x128xf32>, vector<16x128xf32> -> vector<16x128xf32>
    %47 = vector.broadcast %7 : vector<1x128xf32> to vector<16x128xf32>
    %48 = arith.addf %46, %47 : vector<16x128xf32>
    %c0_17 = arith.constant 0 : index
    %c0_18 = arith.constant 0 : index
    %49 = vector.load %arg4[%c0_17, %c0_18] : memref<16x128xf32, #tpu.memory_space<vmem>>, vector<16x128xf32>
    tpu.vector_store %arg4[%c0_17, %c0_18], %48 {strides = array<i32>} : memref<16x128xf32, #tpu.memory_space<vmem>>, vector<16x128xf32>,
    %50 = vector.extract_strided_slice %2 {offsets = [2, 0, 0], sizes = [1, 32, 128], strides = [1, 1, 1]} : vector<3x32x128xf32> to vector<1x32x128xf32>
    %51 = vector.shape_cast %50 : vector<1x32x128xf32> to vector<32x128xf32>
    %cst_19 = arith.constant dense<0.000000e+00> : vector<2x128xf32>
    %52 = tpu.matmul %1, %51, %cst_19 {dimension_numbers = #tpu.dot_dimension_numbers<[1], [0], [0], [1], [0, 0, 1, 1], [], []>} : vector<2x32xf32>, vector<32x128xf32>, vector<2x128xf32> -> vector<2x128xf32>
    %53 = vector.broadcast %8 : vector<1x128xf32> to vector<2x128xf32>
    %54 = arith.addf %52, %53 : vector<2x128xf32>
    %c0_20 = arith.constant 0 : index
    %c0_21 = arith.constant 0 : index
    %55 = vector.load %arg5[%c0_20, %c0_21] : memref<2x128xf32, #tpu.memory_space<vmem>>, vector<2x128xf32>
    tpu.vector_store %arg5[%c0_20, %c0_21], %54 {strides = array<i32>} : memref<2x128xf32, #tpu.memory_space<vmem>>, vector<2x128xf32>,
    return
  }
}

</mosaic_0001>

<bundles_post_ra>
// kernel: tpu_custom_call.1
= control target key start
LH: loop header
LB: loop body
LE: loop exit
PB: predicated region body
PF: predicated region fallthrough
CT: control target
= control target key end

     0   :  { %11 = vsyncpa [#allocation3], 0  ;;  %s713_s0 = inlined_call_operand.hbm [shape: f32[16,32], index: 0, kind: input, shape index: {}]   ;;  %s714_s1 = inlined_call_operand.vmem [shape: f32[2,32], index: 1, kind: input, shape index: {}]   ;;  %s715_s2 = inlined_call_operand.hbm [shape: f32[3,32,128], index: 2, kind: input, shape index: {}]   ;;  %s716_s3 = inlined_call_operand.vmem [shape: f32[8,128], index: 3, kind: input, shape index: {}]   ;;  %s717_s4 = inlined_call_operand.hbm [shape: f32[16,128], index: 4, kind: output, shape index: {0}]   ;;  %s718_s5 = inlined_call_operand.hbm [shape: f32[2,128], index: 5, kind: output, shape index: {1}]  }
   0x1   :  { %12 = vsyncpa [#allocation6], 0 }
   0x2   :  { %13 = vsyncpa [#allocation4], 0 }
   0x3   :  { %14 = vsyncpa [#allocation9], 0  ;;  %s588_s18 = smov [#allocation2]   ;;  %s492_s22 = scalar_lea.hbm %s713_s0, 256 }
   0x4   :  { %s20_s19 = sshll.u32 %s588_s18, 4  ;;  %p493_p0 = scmp.ne.s32.totalorder %s713_s0, %s492_s22  ;;  %s21_s19 = int_to_ptr.vmem [resolvable:$true] %s20_s19 }
   0x5   :  { %p496_p1 = scmp.lt.u32.totalorder %s492_s22, %s713_s0 }
   0x7   :  { %p498_p2 = pnand %p496_p1, %p493_p0 }
   0x9   :  { %501 = shalt.err (!%p498_p2)
}
   0xa   :  { %s502_s27 = scalar_lea.vmem %s21_s19, 256  ;;  %p507_p4 = scmp.lt.s32.totalorder %s21_s19, %s21_s19 }
   0xb   :  { %p503_p3 = scmp.ne.s32.totalorder %s21_s19, %s502_s27  ;;  %p508_p5 = scmp.lt.s32.totalorder %s502_s27, %s502_s27 }
   0xd   :  { %p509_p6 = por %p508_p5, %p507_p4 }
   0xf   :  { %p510_p7 = pnand %p509_p6, %p503_p3 }
  0x11   :  { %513 = shalt.err (!%p510_p7)
}
  0x12   :  { %s589_s28 = smov 128   ;;  %s590_s29 = smov 8  }
  0x13   :  { %26 = dma.hbm_to_vmem [thread:$0]  %s713_s0, 256, %s21_s19, [#allocation3], %s589_s28, %s589_s28, %s590_s29  }
  0x14   :  { %s591_s7 = smov [#allocation5]   ;;  %s514_s11 = scalar_lea.hbm %s715_s2, 1536 }
  0x15   :  { %s34_s8 = sshll.u32 %s591_s7, 4  ;;  %p515_p8 = scmp.ne.s32.totalorder %s715_s2, %s514_s11  ;;  %s35_s8 = int_to_ptr.vmem [resolvable:$true] %s34_s8 }
  0x16   :  { %p518_p9 = scmp.lt.u32.totalorder %s514_s11, %s715_s2 }
  0x18   :  { %p520_p10 = pnand %p518_p9, %p515_p8 }
  0x1a   :  { %523 = shalt.err (!%p520_p10)
}
  0x1b   :  { %s524_s16 = scalar_lea.vmem %s35_s8, 1536  ;;  %p529_p12 = scmp.lt.s32.totalorder %s35_s8, %s35_s8 }
  0x1c   :  { %p525_p11 = scmp.ne.s32.totalorder %s35_s8, %s524_s16  ;;  %p530_p13 = scmp.lt.s32.totalorder %s524_s16, %s524_s16 }
  0x1e   :  { %p531_p0 = por %p530_p13, %p529_p12 }
  0x20   :  { %p532_p1 = pnand %p531_p0, %p525_p11 }
  0x22   :  { %535 = shalt.err (!%p532_p1)
}
  0x23   :  { %40 = dma.hbm_to_vmem [thread:$0]  %s715_s2, 1536, %s35_s8, [#allocation6], %s589_s28, %s589_s28, %s590_s29  }
  0x24   :  { %580 = dma.done.wait [#allocation3], 256  }
  0x25   :  { %581 = vsyncadd [#allocation3], 4294967040 }
  0x26   :  { %582 = dma.done.wait [#allocation6], 1536  }
  0x27   :  { %583 = vsyncadd [#allocation6], 4294965760  ;;  %vm69_vm0 = vcmask 261120   ;;  %v52_v0 = vld [vmem:[#allocation5] sm:$0xff]  ;;  %v53_v1 = vld [vmem:[#allocation5 + $0x8] sm:$0xff]  ;;  %v65_v8 = vlaneseq  ;;  %v592_v43 = vmov 0.0|0.0  }
  0x28   :  { %v54_v2 = vld [vmem:[#allocation5 + $0x10] sm:$0xff]  ;;  %v453_v3 = vpack.c.bf16 %v53_v1, %v52_v0  ;;  %v55_v4 = vld [vmem:[#allocation5 + $0x18] sm:$0xff]  ;;  %v56_v39 = vld [vmem:[#allocation5 + $0x20] sm:$0xff]  ;;  %vm593_vm1 = vmmov 0   ;;  %v594_v52 = vmov 0.0  }
  0x29   :  { %v49_v5 = vld [vmem:[#allocation2] sm:$0xff]  ;;  %v457_v6 = vpack.c.bf16 %v55_v4, %v54_v2  ;;  %v50_v7 = vld [vmem:[#allocation2 + $0x8] sm:$0xff]  ;;  %v659_v9 = vshrl.u32 %v65_v8, 7  ;;  %v57_v40 = vld [vmem:[#allocation5 + $0x28] sm:$0xff] }
  0x2a   :  { %428 = vmatprep.mubr.msk.f32.mxu0 %vm69_vm0, %v49_v5  ;;  %454 = vmatprep.subr.bf16.mxu0 %v453_v3  ;;  %v665_v11 = vld [vmem:[%s716_s3] sm:$0xff]  ;;  %v60_v41 = vld [vmem:[#allocation5 + $0x40] sm:$0xff]  ;;  %v461_v42 = vpack.c.bf16 %v57_v40, %v56_v39  ;;  %v61_v44 = vld [vmem:[#allocation5 + $0x48] sm:$0xff] }
  0x2b   :  { %456 = vmatpush3.bf16.msra.mxu0 %v453_v3  ;;  %v67_v10 = vsub.s32 0, %v659_v9  ;;  %v58_v45 = vld [vmem:[#allocation5 + $0x30] sm:$0xff]  ;;  %v59_v46 = vld [vmem:[#allocation5 + $0x38] sm:$0xff]  ;;  %v470_v47 = vpack.c.bf16 %v61_v44, %v60_v41  ;;  %v191_v60 = vsub.s32 1, %v659_v9  ;;  %v197_v61 = vsub.s32 2, %v659_v9 }
  0x2c   :  { %458 = vmatprep.subr.bf16.mxu0 %v457_v6  ;;  %v465_v48 = vpack.c.bf16 %v59_v46, %v58_v45  ;;  %462 = vmatprep.subr.bf16.mxu1 %v461_v42  ;;  %v62_v49 = vld [vmem:[#allocation5 + $0x50] sm:$0xff]  ;;  %v63_v50 = vld [vmem:[#allocation5 + $0x58] sm:$0xff]  ;;  %v290_v8 = vsub.s32 4, %v659_v9 }
  0x2d   :  { %v68_v12 = vrot.slane %v665_v11, %v67_v10  ;;  %464 = vmatpush3.bf16.msra.mxu1 %v461_v42  ;;  %v473_v51 = vpack.c.bf16 %v63_v50, %v62_v49  ;;  %v51_v53 = vld [vmem:[%s714_s1] sm:$0x3]  ;;  %v192_v62 = vrot.slane %v665_v11, %v191_v60  ;;  %v198_v1 = vrot.slane %v665_v11, %v197_v61  ;;  %s595_s1 = smov [#allocation8]  }
  0x2e   :  { %466 = vmatprep.subr.bf16.mxu1 %v465_v48  ;;  %v291_v10 = vrot.slane %v665_v11, %v290_v8  ;;  %s384_s20 = sshll.u32 %s595_s1, 4  ;;  %s385_s20 = int_to_ptr.vmem [resolvable:$true] %s384_s20 }
  0x2f   :  { %460 = vmatpush3.bf16.msra.mxu0 %v457_v6  ;;  %s536_s21 = scalar_lea.vmem %s385_s20, 32  ;;  %p541_p3 = scmp.lt.s32.totalorder %s385_s20, %s385_s20 }
  0x30   :  { %469 = vmatprep.subr.bf16.mxu0 %v592_v43  ;;  %p537_p2 = scmp.ne.s32.totalorder %s385_s20, %s536_s21  ;;  %p542_p4 = scmp.lt.s32.totalorder %s536_s21, %s536_s21 }
  0x31   :  { %468 = vmatpush3.bf16.msra.mxu1 %v465_v48 }
  0x32   :  { %429 = vmatmul.mubr.msk.f32.vlgmr.msra.gmra.mrb[0].mxu0 %vm69_vm0, %v50_v7  ;;  %p543_p5 = por %p542_p4, %p541_p3 }
  0x33   :  { %471 = vmatpush3.bf16.msra.mxu0 %v470_v47  ;;  %450 = vmatprep.mubr.msk.f32.mxu0 %vm593_vm1, %v594_v52 }
  0x34   :  { %472 = vmatprep.subr.bf16.mxu0 %v592_v43  ;;  %p544_p6 = pnand %p543_p5, %p537_p2 }
  0x37   :  { %474 = vmatpush3.bf16.msra.mxu0 %v473_v51 }
  0x3a   :  { %451 = vmatmul.mubr.msk.f32.vlgmr.msra.gmra.mrb[2].mxu0 %vm69_vm0, %v51_v53 }
 0x105   :  { %v430_v13 = vpop.f32.mrb[0].mxu0 }
 0x106   :  { %v148_v14 = vadd.f32 %v430_v13, %v68_v12  ;;  %v142_v15 = vpop.f32.mrb[1].mxu0 }
 0x107   :  { %v143_v16 = vadd.f32 %v142_v15, %v68_v12 }
 0x108   :  { %v155_v17 = vmul.f32 0.70710677, %v148_v14  ;;  %v152_v24 = vmul.f32 0.5, %v148_v14 }
 0x109   :  { %v154_v18 = vmul.f32 0.70710677, %v143_v16  ;;  %v151_v21 = vmul.f32 0.5, %v143_v16 }
 0x10a   :  { %484 = verf.f32 %v155_v17 }
 0x10b   :  { %486 = verf.f32 %v154_v18 }
 0x10d   :  { %v361_v12 = vpop.f32.mrb[2].mxu0 }
 0x10e   :  { %v452_v13 = vpop.f32.mrb[3].mxu0  ;;  %v362_v14 = vadd.f32 %v361_v12, %v291_v10 }
 0x110   :  { %365 = vst [vmem:[#allocation8] sm:$0x3] %v362_v14 }
 0x114   :  { %v485_v19 = vpop.eup %484 }
 0x115   :  { %v487_v20 = vpop.eup %486  ;;  %v159_v23 = vadd.f32 1.0, %v485_v19 }
 0x116   :  { %v158_v22 = vadd.f32 1.0, %v487_v20 }
 0x117   :  { %v161_v27 = vmul.f32 %v159_v23, %v152_v24 }
 0x118   :  { %v160_v25 = vmul.f32 %v158_v22, %v151_v21 }
 0x119   :  { %v165_v28 = vsel %vm69_vm0, %v161_v27, 0.0 }
 0x11a   :  { %v162_v26 = vsel %vm69_vm0, %v160_v25, 0.0 }
 0x11b   :  { %163 = vadd.xlane.f32.xlu0 %v162_v26 }
 0x11f   :  { %166 = vadd.xlane.f32.xlu0 %v165_v28 }
 0x1a8   :  { %v164_v29 = vpop.xlane.xlu0 %163 }
 0x1a9   :  { %v169_v30 = vmul.f32 0.03125, %v164_v29 }
 0x1ab   :  { %v171_v31 = vsub.f32 %v160_v25, %v169_v30 }
 0x1ac   :  { %v167_v32 = vpop.xlane.xlu0 %166 }
 0x1ad   :  { %v170_v33 = vmul.f32 0.03125, %v167_v32  ;;  %v173_v34 = vmul.f32 %v171_v31, %v171_v31 }
 0x1af   :  { %v172_v35 = vsub.f32 %v161_v27, %v170_v33  ;;  %v175_v36 = vsel %vm69_vm0, %v173_v34, 0.0 }
 0x1b0   :  { %176 = vadd.xlane.f32.xlu1 %v175_v36 }
 0x1b1   :  { %v174_v37 = vmul.f32 %v172_v35, %v172_v35 }
 0x1b3   :  { %v178_v38 = vsel %vm69_vm0, %v174_v37, 0.0 }
 0x1b4   :  { %179 = vadd.xlane.f32.xlu1 %v178_v38 }
 0x23d   :  { %v177_v54 = vpop.xlane.xlu1 %176 }
 0x23e   :  { %v181_v55 = vmul.f32 0.03125, %v177_v54 }
 0x240   :  { %v183_v56 = vadd.f32 1e-12, %v181_v55 }
 0x241   :  { %v180_v57 = vpop.xlane.xlu1 %179 }
 0x242   :  { %488 = vrsqrt.f32 %v183_v56  ;;  %v182_v58 = vmul.f32 0.03125, %v180_v57 }
 0x244   :  { %v184_v59 = vadd.f32 1e-12, %v182_v58 }
 0x246   :  { %490 = vrsqrt.f32 %v184_v59 }
 0x24c   :  { %v489_v63 = vpop.eup %488 }
 0x24d   :  { %v187_v0 = vmul.f32 %v489_v63, %v171_v31 }
 0x24f   :  { %v193_v2 = vmul.f32 %v192_v62, %v187_v0 }
 0x250   :  { %v491_v3 = vpop.eup %490 }
 0x251   :  { %v188_v4 = vmul.f32 %v491_v3, %v172_v35  ;;  %v199_v5 = vadd.f32 %v198_v1, %v193_v2 }
 0x253   :  { %v194_v6 = vmul.f32 %v192_v62, %v188_v4  ;;  %439 = vmatprep.mubr.msk.f32.mxu1 %vm69_vm0, %v199_v5 }
 0x255   :  { %v200_v7 = vadd.f32 %v198_v1, %v194_v6 }
 0x257   :  { %440 = vmatmul.mubr.msk.f32.vlgmr.msra.gmra.mrb[0].mxu1 %vm69_vm0, %v200_v7 }
 0x258   :  { %547 = shalt.err (!%p544_p6)
}
 0x259   :  { %s548_s24 = scalar_lea.hbm %s718_s5, 32 }
 0x25a   :  { %p549_p7 = scmp.ne.s32.totalorder %s718_s5, %s548_s24  ;;  %p552_p8 = scmp.lt.u32.totalorder %s548_s24, %s718_s5 }
 0x25c   :  { %p554_p9 = pnand %p552_p8, %p549_p7 }
 0x25e   :  { %557 = shalt.err (!%p554_p9)
}
 0x25f   :  { %387 = dma.vmem_to_hbm [thread:$0]  %s385_s20, 32, %s718_s5, [#allocation9]   ;;  %v203_v15 = vsub.s32 3, %v659_v9 }
 0x260   :  { %s596_s8 = smov [#allocation7]  }
 0x261   :  { %v204_v16 = vrot.slane %v665_v11, %v203_v15  ;;  %s371_s9 = sshll.u32 %s596_s8, 4  ;;  %s372_s9 = int_to_ptr.vmem [resolvable:$true] %s371_s9 }
 0x262   :  { %s558_s10 = scalar_lea.vmem %s372_s9, 256  ;;  %p563_p11 = scmp.lt.s32.totalorder %s372_s9, %s372_s9 }
 0x263   :  { %p559_p10 = scmp.ne.s32.totalorder %s372_s9, %s558_s10  ;;  %p564_p12 = scmp.lt.s32.totalorder %s558_s10, %s558_s10 }
 0x265   :  { %p565_p13 = por %p564_p12, %p563_p11 }
 0x267   :  { %p566_p0 = pnand %p565_p13, %p559_p10 }
 0x32a   :  { %v441_v17 = vpop.f32.mrb[0].mxu1 }
 0x32b   :  { %v283_v18 = vadd.f32 %v441_v17, %v204_v16  ;;  %v277_v19 = vpop.f32.mrb[1].mxu1 }
 0x32c   :  { %v278_v20 = vadd.f32 %v277_v19, %v204_v16 }
 0x32d   :  { %287 = vst [vmem:[#allocation7 + $0x8] sm:$0xff] %v283_v18 }
 0x32e   :  { %286 = vst [vmem:[#allocation7] sm:$0xff] %v278_v20 }
 0x32f   :  { %569 = shalt.err (!%p566_p0)
}
 0x330   :  { %s570_s12 = scalar_lea.hbm %s717_s4, 256 }
 0x331   :  { %p571_p1 = scmp.ne.s32.totalorder %s717_s4, %s570_s12  ;;  %p574_p2 = scmp.lt.u32.totalorder %s570_s12, %s717_s4 }
 0x333   :  { %p576_p3 = pnand %p574_p2, %p571_p1 }
 0x335   :  { %579 = shalt.err (!%p576_p3)
}
 0x336   :  { %377 = dma.vmem_to_hbm [thread:$0]  %s372_s9, 256, %s717_s4, [#allocation4], %s589_s28, %s589_s28, %s590_s29  }
 0x337   :  { %584 = dma.done.wait [#allocation4], 256  }
 0x338   :  { %585 = vsyncadd [#allocation4], 4294967040 }
 0x339   :  { %586 = dma.done.wait [#allocation9], 32  }
 0x33a   :  { %587 = vsyncadd [#allocation9], 4294967264 }
 0x33b   :  { %394 = vsyncpa [#allocation3], 1 }
 0x33c   :  { %395 = vsyncpa [#allocation6], 1 }
 0x33d   :  { %396 = vsyncpa [#allocation4], 1 }
 0x33e   :  { %397 = vsyncpa [#allocation9], 1 }

</bundles_post_ra>
